<compile_context>
chip_gen: v7x
topology: tpu7x:2x2x1
jax: 0.10.0
libtpu: 0.0.40
codegen_flags: <defaults>
</compile_context>

<pallas_src>
import math

import jax
import jax.numpy as jnp
from jax import lax
from jax.experimental import pallas as pl
from jax.experimental.pallas import tpu as pltpu


def _round_up(x, m):
    return ((x + m - 1) // m) * m


def _gelu_exact(y):
    # Matches nn.GELU() default (erf form).
    return 0.5 * y * (1.0 + lax.erf(y * (1.0 / math.sqrt(2.0))))


def _fold_bn(w, conv_b, gamma, beta, mean, var, eps):
    """Fold conv bias + BatchNorm (inference) into weights + a single bias:
       y = (x@w + conv_b - mean) * scale + beta = x@(w*scale) + bias."""
    scale = gamma / jnp.sqrt(var + eps)                         # (Cout,) f32
    w_f = (w * scale).astype(jnp.bfloat16)                      # (3,3,Cin,Cout)
    bias = ((conv_b - mean) * scale + beta).reshape(1, -1).astype(jnp.float32)
    return w_f, bias


# ---------------------------------------------------------------------------
# Stride-2 layers: (input-fused) im2col + fused matmul/bias/GELU kernel
# ---------------------------------------------------------------------------
def _matmul_bias_gelu_kernel(x_ref, w_ref, b_ref, o_ref):
    """One M-tile: (TM,K)@(K,N) on the MXU with f32 accumulation, + folded
    conv/BN bias, + exact GELU."""
    acc = jnp.dot(x_ref[...], w_ref[...], preferred_element_type=jnp.float32)
    y = acc + b_ref[...]                      # (1, N) f32 bias, resident
    o_ref[...] = _gelu_exact(y).astype(o_ref.dtype)


def conv_bn_gelu_im2col(x_nhwc, w, conv_b, gamma, beta, mean, var, *, stride,
                        eps=1e-5, out_dtype=jnp.bfloat16):
    """3x3 conv (padding=1, given stride) + BatchNorm2d(eval) + GELU.

    im2col rows are built in bf16 in plain JAX; allow_input_fusion lets XLA
    fuse that producer into the kernel's input stream (no x_col round trip).
    The matmul + bias + GELU hot path is a Pallas kernel tiled over M.
    """
    B, H, W, Cin = x_nhwc.shape
    Cout = w.shape[-1]
    Ho = (H + 2 - 3) // stride + 1
    Wo = (W + 2 - 3) // stride + 1

    xp = jnp.pad(x_nhwc.astype(jnp.bfloat16), ((0, 0), (1, 1), (1, 1), (0, 0)))
    cols = []
    for kh in range(3):
        for kw in range(3):
            cols.append(
                xp[:, kh:kh + stride * Ho:stride, kw:kw + stride * Wo:stride, :])
    x_col = jnp.concatenate(cols, axis=-1).reshape(B * Ho * Wo, 9 * Cin)

    w_f, bias = _fold_bn(w, conv_b, gamma, beta, mean, var, eps)
    w_mat = w_f.reshape(9 * Cin, Cout)

    M, K = x_col.shape
    # K-aware M tile: target ~2 MiB of lane-padded bf16 x-tile per grid step.
    k_pad = _round_up(K, 128)
    tm_target = max(512, _round_up((2 * 1024 * 1024) // (2 * k_pad), 512))
    tm = min(tm_target, _round_up(M, 8))
    # Give megacore (v7x) at least two grid steps when M is big enough.
    if M > 1024 and _round_up(M, tm) // tm < 2:
        tm = _round_up((M + 1) // 2, 8)
    m_pad = _round_up(M, tm)
    if m_pad != M:
        x_col = jnp.pad(x_col, ((0, m_pad - M), (0, 0)))

    flops = 2 * m_pad * K * Cout
    bytes_accessed = (m_pad * K * 2              # x rows (bf16)
                      + K * Cout * 2             # weights (bf16)
                      + Cout * 4                 # bias (f32)
                      + m_pad * Cout * jnp.dtype(out_dtype).itemsize)
    cost = pl.CostEstimate(flops=flops, transcendentals=m_pad * Cout,
                           bytes_accessed=bytes_accessed)

    out = pl.pallas_call(
        _matmul_bias_gelu_kernel,
        out_shape=jax.ShapeDtypeStruct((m_pad, Cout), out_dtype),
        grid=(m_pad // tm,),
        in_specs=[
            pl.BlockSpec((tm, K), lambda i: (i, 0)),     # streamed M tiles
            pl.BlockSpec((K, Cout), lambda i: (0, 0)),   # weights, resident
            pl.BlockSpec((1, Cout), lambda i: (0, 0)),   # bias, resident
        ],
        out_specs=pl.BlockSpec((tm, Cout), lambda i: (i, 0)),
        compiler_params=pltpu.CompilerParams(
            dimension_semantics=("parallel",),           # megacore on v7x
            vmem_limit_bytes=32 * 1024 * 1024,
            allow_input_fusion=[True, False, False],     # fuse im2col producer
        ),
        cost_estimate=cost,
    )(x_col, w_mat, bias)

    if m_pad != M:
        out = out[:M]            # padded rows (=GELU(bias)) sliced off
    return out.reshape(B, Ho, Wo, Cout)


# ---------------------------------------------------------------------------
# Stride-1 layer: fully fused conv3x3 + BN + GELU (no im2col at all)
# ---------------------------------------------------------------------------
def _conv3x3_s1_bias_gelu_kernel(x_ref, w_ref, b_ref, o_ref):
    """One (batch, row-tile) step of a fused 3x3 stride-1 conv + bias + GELU.

    x_ref: (1, H+2, W+2, Cin) whole padded image; resident across the row
           axis (same block index -> no re-DMA between row tiles).
    w_ref: (9, Cin, Cout) BN-folded taps (bf16), resident.
    b_ref: (1, Cout) folded bias (f32), resident.
    o_ref: (1, TH, Wo, Cout) output rows [r*TH, r*TH+TH).
    """
    r = pl.program_id(1)
    _, th, wo, cout = o_ref.shape
    cin = x_ref.shape[3]

    acc = jnp.zeros((th * wo, cout), jnp.float32)
    for kh in range(3):
        for kw in range(3):
            win = x_ref[0, pl.ds(r * th + kh, th), kw:kw + wo, :]   # (th,wo,cin)
            acc = acc + jnp.dot(win.reshape(th * wo, cin),
                                w_ref[kh * 3 + kw],
                                preferred_element_type=jnp.float32)
    y = acc + b_ref[...]
    o_ref[...] = _gelu_exact(y).reshape(1, th, wo, cout).astype(o_ref.dtype)


def _pick_row_tile(ho, wo, target_rows=4096):
    """Largest divisor of ho keeping the (rows*wo, Cout) f32 accumulator small."""
    cap = max(1, target_rows // max(wo, 1))
    best = 1
    for d in range(1, min(ho, cap) + 1):
        if ho % d == 0:
            best = d
    return best


def conv_bn_gelu_s1_fused(x_nhwc, w, conv_b, gamma, beta, mean, var, *,
                          eps=1e-5, out_dtype=jnp.bfloat16):
    """Fully fused 3x3 conv (stride 1, padding 1) + BatchNorm2d(eval) + GELU.

    HBM traffic is ~1x padded input + 1x output: the nine taps are extracted
    in-kernel from the VMEM-resident padded image, never materialized in HBM.
    """
    B, H, W, Cin = x_nhwc.shape
    Cout = w.shape[-1]
    Ho, Wo = H, W
    Hp, Wp = H + 2, W + 2

    xp = jnp.pad(x_nhwc.astype(jnp.bfloat16), ((0, 0), (1, 1), (1, 1), (0, 0)))
    w_f, bias = _fold_bn(w, conv_b, gamma, beta, mean, var, eps)
    w_taps = w_f.reshape(9, Cin, Cout)

    th = _pick_row_tile(Ho, Wo)
    grid = (B, Ho // th)

    flops = 2 * B * Ho * Wo * 9 * Cin * Cout
    bytes_accessed = (B * Hp * Wp * Cin * 2 + 9 * Cin * Cout * 2 + Cout * 4
                      + B * Ho * Wo * Cout * jnp.dtype(out_dtype).itemsize)
    cost = pl.CostEstimate(flops=flops, transcendentals=B * Ho * Wo * Cout,
                           bytes_accessed=bytes_accessed)

    return pl.pallas_call(
        _conv3x3_s1_bias_gelu_kernel,
        out_shape=jax.ShapeDtypeStruct((B, Ho, Wo, Cout), out_dtype),
        grid=grid,
        in_specs=[
            # Whole padded image per batch element; index_map ignores the row
            # axis so it is fetched once per b and revisited across row tiles.
            pl.BlockSpec((1, Hp, Wp, Cin), lambda b, r: (b, 0, 0, 0)),
            pl.BlockSpec((9, Cin, Cout), lambda b, r: (0, 0, 0)),
            pl.BlockSpec((1, Cout), lambda b, r: (0, 0)),
        ],
        out_specs=pl.BlockSpec((1, th, Wo, Cout), lambda b, r: (b, r, 0, 0)),
        compiler_params=pltpu.CompilerParams(
            # Batch axis parallel (megacore); row axis arbitrary so the
            # resident padded image is revisited, not re-fetched.
            dimension_semantics=("parallel", "arbitrary"),
            vmem_limit_bytes=32 * 1024 * 1024,
            allow_input_fusion=[True, False, False],     # fuse the pad producer
        ),
        cost_estimate=cost,
    )(xp, w_taps, bias)


# ---------------------------------------------------------------------------
# PatchEmbed forward + synthetic params
# ---------------------------------------------------------------------------
def init_patch_embed_params(key, in_chans, embed_dim):
    """Deterministic synthetic parameters matching the kernel_size==7 branch:
    Conv(in,32,s2) / Conv(32,32,s1) / Conv(32,embed_dim,s2), each with BN."""
    dims = [(in_chans, 32), (32, 32), (32, embed_dim)]
    params = []
    for cin, cout in dims:
        key, kw, kb, kg, kbe, km, kv = jax.random.split(key, 7)
        w = 0.05 * jax.random.normal(kw, (3, 3, cin, cout), jnp.float32)
        b = 0.01 * jax.random.normal(kb, (cout,), jnp.float32)
        gamma = 1.0 + 0.1 * jax.random.normal(kg, (cout,), jnp.float32)
        beta = 0.1 * jax.random.normal(kbe, (cout,), jnp.float32)
        mean = 0.05 * jax.random.normal(km, (cout,), jnp.float32)
        var = 0.9 + 0.1 * jnp.abs(jax.random.normal(kv, (cout,), jnp.float32))
        params.append((w, b, gamma, beta, mean, var))
    return params


def patch_embed_forward(x_nchw, params, patch_size=(4, 4),
                        final_dtype=jnp.bfloat16):
    """PatchEmbed.forward: x (B,C,H,W) -> (tokens (B, H'*W', E), (H//p, W//p))."""
    B, C, H, W = x_nchw.shape
    x = jnp.transpose(x_nchw, (0, 2, 3, 1))                  # NCHW -> NHWC
    x = conv_bn_gelu_im2col(x, *params[0], stride=2, out_dtype=jnp.bfloat16)
    x = conv_bn_gelu_s1_fused(x, *params[1], out_dtype=jnp.bfloat16)
    # Final stage defaults to bf16 (perf review): halves the largest
    # writeback; pass final_dtype=jnp.float32 to match the PyTorch dtype.
    x = conv_bn_gelu_im2col(x, *params[2], stride=2, out_dtype=final_dtype)
    Bc, Ho, Wo, E = x.shape
    # NHWC reshape (B, Ho*Wo, E) == NCHW flatten(2).transpose(1, 2)
    tokens = x.reshape(Bc, Ho * Wo, E)
    return tokens, (H // patch_size[0], W // patch_size[1])


if __name__ == "__main__":
    # Small config consistent with the module: img_size=16, patch_size=4,
    # kernel_size=7 (-> 3-conv branch), in_chans=4, embed_dim=32.
    key = jax.random.PRNGKey(0)
    k_x, k_p = jax.random.split(key)
    x = jax.random.normal(k_x, (2, 4, 16, 16), jnp.float32)  # NCHW like PyTorch
    params = init_patch_embed_params(k_p, in_chans=4, embed_dim=32)

    tokens, (Hp, Wp) = patch_embed_forward(x, params, patch_size=(4, 4))
    tokens = jax.block_until_ready(tokens)

    assert tokens.shape == (2, 16, 32), tokens.shape
    assert (Hp, Wp) == (4, 4)
    assert bool(jnp.all(jnp.isfinite(tokens)))
    print("KERNEL_OK")
</pallas_src>

<mosaic_0001>
module attributes {stable_mosaic.version = 11 : i64} {
  func.func @_matmul_bias_gelu_kernel(%arg0: i32, %arg1: memref<128x36xbf16, #tpu.memory_space<vmem>>, %arg2: memref<36x32xbf16, #tpu.memory_space<vmem>>, %arg3: memref<1x32xf32, #tpu.memory_space<vmem>>, %arg4: memref<128x32xbf16, #tpu.memory_space<vmem>>) attributes {dimension_semantics = [#tpu.dimension_semantics<parallel>], iteration_bounds = array<i64: 1>, scalar_prefetch = 0 : i64, scratch_operands = 0 : i64, tpu.core_type = #tpu.core_type<tc>, window_params = [{transform_indices = @transform_0, window_bounds = array<i64: 128, 36>}, {pipeline_mode = #tpu.pipeline_mode<synchronous>, transform_indices = @transform_1, window_bounds = array<i64: 36, 32>}, {pipeline_mode = #tpu.pipeline_mode<synchronous>, transform_indices = @transform_2, window_bounds = array<i64: 1, 32>}, {transform_indices = @transform_3, window_bounds = array<i64: 128, 32>}]} {
    %c0 = arith.constant 0 : index
    %c0_0 = arith.constant 0 : index
    %0 = vector.load %arg1[%c0, %c0_0] : memref<128x36xbf16, #tpu.memory_space<vmem>>, vector<128x36xbf16>
    %c0_1 = arith.constant 0 : index
    %c0_2 = arith.constant 0 : index
    %1 = vector.load %arg2[%c0_1, %c0_2] : memref<36x32xbf16, #tpu.memory_space<vmem>>, vector<36x32xbf16>
    %cst = arith.constant dense<0.000000e+00> : vector<128x32xf32>
    %2 = tpu.matmul %0, %1, %cst {dimension_numbers = #tpu.dot_dimension_numbers<[1], [0], [0], [1], [0, 0, 1, 1], [], []>} : vector<128x36xbf16>, vector<36x32xbf16>, vector<128x32xf32> -> vector<128x32xf32>
    %c0_3 = arith.constant 0 : index
    %c0_4 = arith.constant 0 : index
    %3 = vector.load %arg3[%c0_3, %c0_4] : memref<1x32xf32, #tpu.memory_space<vmem>>, vector<1x32xf32>
    %4 = vector.broadcast %3 : vector<1x32xf32> to vector<128x32xf32>
    %5 = arith.addf %2, %4 : vector<128x32xf32>
    %cst_5 = arith.constant 5.000000e-01 : f32
    %6 = vector.broadcast %cst_5 : f32 to vector<128x32xf32>
    %7 = arith.mulf %6, %5 : vector<128x32xf32>
    %cst_6 = arith.constant 0.707106769 : f32
    %8 = vector.broadcast %cst_6 : f32 to vector<128x32xf32>
    %9 = arith.mulf %5, %8 : vector<128x32xf32>
    %10 = math.erf %9 : vector<128x32xf32>
    %cst_7 = arith.constant 1.000000e+00 : f32
    %11 = vector.broadcast %cst_7 : f32 to vector<128x32xf32>
    %12 = arith.addf %11, %10 : vector<128x32xf32>
    %13 = arith.mulf %7, %12 : vector<128x32xf32>
    %14 = arith.truncf %13 : vector<128x32xf32> to vector<128x32xbf16>
    %c0_8 = arith.constant 0 : index
    %c0_9 = arith.constant 0 : index
    %15 = vector.load %arg4[%c0_8, %c0_9] : memref<128x32xbf16, #tpu.memory_space<vmem>>, vector<128x32xbf16>
    tpu.vector_store %arg4[%c0_8, %c0_9], %14 {strides = array<i32>} : memref<128x32xbf16, #tpu.memory_space<vmem>>, vector<128x32xbf16>,
    return
  }
  func.func @transform_0(%arg0: i32) -> (i32, i32) {
    %c0_i32 = arith.constant 0 : i32
    %c0_i32_0 = arith.constant 0 : i32
    return %arg0, %c0_i32 : i32, i32
  }
  func.func @transform_1(%arg0: i32) -> (i32, i32) {
    %c0_i32 = arith.constant 0 : i32
    %c0_i32_0 = arith.constant 0 : i32
    %c0_i32_1 = arith.constant 0 : i32
    return %c0_i32, %c0_i32_0 : i32, i32
  }
  func.func @transform_2(%arg0: i32) -> (i32, i32) {
    %c0_i32 = arith.constant 0 : i32
    %c0_i32_0 = arith.constant 0 : i32
    %c0_i32_1 = arith.constant 0 : i32
    return %c0_i32, %c0_i32_0 : i32, i32
  }
  func.func @transform_3(%arg0: i32) -> (i32, i32) {
    %c0_i32 = arith.constant 0 : i32
    %c0_i32_0 = arith.constant 0 : i32
    return %arg0, %c0_i32 : i32, i32
  }
}

</mosaic_0001>

<bundles_post_ra>
// kernel: tpu_custom_call.1
= control target key start
LH: loop header
LB: loop body
LE: loop exit
PB: predicated region body
PF: predicated region fallthrough
CT: control target
= control target key end

     0   :  { %vm98_vm0 = vcmask 293888   ;;  %vm123_vm1 = vcmask 1041408   ;;  %vm368_vm2 = vcmask 257024   ;;  %s707_s1 = inlined_call_operand.vmem [shape: bf16[36,32], index: 1, kind: input, shape index: {}]   ;;  %s708_s0 = inlined_call_operand.vmem [shape: bf16[128,36], index: 0, kind: input, shape index: {}]   ;;  %s709_s2 = inlined_call_operand.vmem [shape: f32[1,32], index: 2, kind: input, shape index: {}]   ;;  %s710_s3 = inlined_call_operand.vmem [shape: bf16[128,32], index: 3, kind: output, shape index: {}]  }
   0x1   :  { %v482_v0 = vld [vmem:[%s707_s1] sm:$0xff]   ;;  %v483_v1 = vld [vmem:[%s707_s1 + $0x8] sm:$0xff]   ;;  %v484_v2 = vld [vmem:[%s707_s1 + $0x10] ss:$0 sps:$4 sm:$0x33]  }
   0x2   :  { %452 = vmatprep.subr.bf16.mxu0 %v482_v0  ;;  %474 = vmatprep.subr.bf16.mxu1 %v482_v0  ;;  %v485_v3 = vld [vmem:[%s708_s0] sm:$0xff]   ;;  %v125_v5 = vsel %vm123_vm1, %v484_v2, 0  ;;  %v487_v6 = vld [vmem:[%s708_s0 + $0x8] sm:$0xff]   ;;  %v489_v8 = vld [vmem:[%s708_s0 + $0x10] sm:$0xff]  }
   0x3   :  { %453 = vmatpush3.bf16.msra.mxu0 %v482_v0  ;;  %477 = vmatpush3.bf16.msra.mxu1 %v482_v0  ;;  %v486_v4 = vld [vmem:[%s708_s0 + $0x20] sm:$0xff]   ;;  %v488_v7 = vld [vmem:[%s708_s0 + $0x28] sm:$0xff]   ;;  %v490_v9 = vld [vmem:[%s708_s0 + $0x30] sm:$0xff]  }
   0x4   :  { %454 = vmatprep.subr.bf16.mxu0 %v483_v1  ;;  %475 = vmatprep.subr.bf16.mxu1 %v483_v1  ;;  %v491_v10 = vld [vmem:[%s708_s0 + $0x18] sm:$0xff]   ;;  %v589_v12 = vld [vmem:[%s709_s2] ss:$0 sm:$0xff] }
   0x5   :  { %458 = vmatprep.mubr.msk.bf16.mxu0 %vm98_vm0, %v485_v3  ;;  %466 = vmatprep.mubr.msk.bf16.mxu1 %vm98_vm0, %v486_v4  ;;  %v492_v11 = vld [vmem:[%s708_s0 + $0x38] sm:$0xff]  }
   0x7   :  { %455 = vmatpush3.bf16.msra.mxu0 %v483_v1  ;;  %478 = vmatpush3.bf16.msra.mxu1 %v483_v1 }
   0x8   :  { %480 = vmatprep.subr.msk.bf16.mxu0 %vm123_vm1, %v484_v2  ;;  %481 = vmatprep.subr.msk.bf16.mxu1 %vm123_vm1, %v484_v2 }
   0xb   :  { %457 = vmatpush3.bf16.msra.mxu0 %v125_v5  ;;  %479 = vmatpush3.bf16.msra.mxu1 %v125_v5 }
   0xe   :  { %459 = vmatmul.mubr.msk.bf16.vlgmr.msra.gmra.mrb[0].mxu0 %vm98_vm0, %v487_v6  ;;  %467 = vmatmul.mubr.msk.bf16.vlgmr.msra.gmra.mrb[0].mxu1 %vm98_vm0, %v488_v7 }
   0xf   :  { %462 = vmatprep.mubr.msk.bf16.mxu0 %vm98_vm0, %v489_v8  ;;  %470 = vmatprep.mubr.msk.bf16.mxu1 %vm98_vm0, %v490_v9 }
  0x16   :  { %463 = vmatmul.mubr.msk.bf16.gmra.mrb[4].mxu0 %vm98_vm0, %v491_v10  ;;  %471 = vmatmul.mubr.msk.bf16.gmra.mrb[4].mxu1 %vm98_vm0, %v492_v11 }
  0xe1   :  { %v460_v13 = vpop.f32.mrb[0].mxu0  ;;  %v468_v14 = vpop.f32.mrb[0].mxu1 }
  0xe2   :  { %v170_v15 = vadd.f32 %v460_v13, %v589_v12  ;;  %v202_v16 = vadd.f32 %v468_v14, %v589_v12  ;;  %v161_v17 = vpop.f32.mrb[1].mxu0  ;;  %v193_v18 = vpop.f32.mrb[1].mxu1 }
  0xe3   :  { %v162_v19 = vadd.f32 %v589_v12, %v161_v17  ;;  %v194_v20 = vadd.f32 %v589_v12, %v193_v18  ;;  %v461_v21 = vpop.f32.mrb[2].mxu0  ;;  %v469_v22 = vpop.f32.mrb[2].mxu1 }
  0xe4   :  { %v242_v23 = vmul.f32 0.70710677, %v170_v15  ;;  %v250_v24 = vmul.f32 0.70710677, %v202_v16  ;;  %v173_v27 = vadd.f32 %v461_v21, %v589_v12  ;;  %v205_v28 = vadd.f32 %v469_v22, %v589_v12  ;;  %v164_v29 = vpop.f32.mrb[3].mxu0  ;;  %v196_v30 = vpop.f32.mrb[3].mxu1 }
  0xe5   :  { %v240_v25 = vmul.f32 0.70710677, %v162_v19  ;;  %v248_v26 = vmul.f32 0.70710677, %v194_v20  ;;  %v165_v31 = vadd.f32 %v589_v12, %v164_v29  ;;  %v599_v32 = vadd.f32 %v589_v12, %v196_v30 }
  0xe6   :  { %493 = verf.f32 %v242_v23  ;;  %v243_v33 = vmul.f32 0.70710677, %v173_v27  ;;  %v251_v34 = vmul.f32 0.70710677, %v205_v28  ;;  %v226_v51 = vmul.f32 0.5, %v170_v15 }
  0xe7   :  { %495 = verf.f32 %v250_v24  ;;  %v241_v35 = vmul.f32 0.70710677, %v165_v31  ;;  %v249_v37 = vmul.f32 0.70710677, %v599_v32  ;;  %v234_v58 = vmul.f32 0.5, %v202_v16 }
  0xe8   :  { %497 = verf.f32 %v240_v25  ;;  %v224_v59 = vmul.f32 0.5, %v162_v19  ;;  %v232_v60 = vmul.f32 0.5, %v194_v20  ;;  %v227_v63 = vmul.f32 0.5, %v173_v27 }
  0xe9   :  { %499 = verf.f32 %v248_v26  ;;  %v464_v36 = vpop.f32.mrb[4].mxu0  ;;  %v472_v39 = vpop.f32.mrb[4].mxu1  ;;  %v235_v3 = vmul.f32 0.5, %v205_v28  ;;  %v225_v14 = vmul.f32 0.5, %v165_v31  ;;  %v233_v27 = vmul.f32 0.5, %v599_v32 }
  0xea   :  { %501 = verf.f32 %v243_v33  ;;  %v603_v38 = vadd.f32 %v464_v36, %v589_v12  ;;  %v177_v40 = vpop.f32.mrb[5].mxu0  ;;  %v606_v41 = vadd.f32 %v472_v39, %v589_v12  ;;  %v209_v43 = vpop.f32.mrb[5].mxu1 }
  0xeb   :  { %503 = verf.f32 %v251_v34  ;;  %v609_v42 = vadd.f32 %v589_v12, %v177_v40  ;;  %v465_v44 = vpop.f32.mrb[6].mxu0  ;;  %v613_v46 = vadd.f32 %v589_v12, %v209_v43  ;;  %v473_v47 = vpop.f32.mrb[6].mxu1 }
  0xec   :  { %505 = verf.f32 %v241_v35  ;;  %v246_v45 = vmul.f32 0.70710677, %v603_v38  ;;  %v180_v48 = vpop.f32.mrb[7].mxu0  ;;  %v254_v49 = vmul.f32 0.70710677, %v606_v41  ;;  %v212_v50 = vpop.f32.mrb[7].mxu1  ;;  %v619_v54 = vadd.f32 %v465_v44, %v589_v12 }
  0xed   :  { %507 = verf.f32 %v249_v37  ;;  %v244_v52 = vmul.f32 0.70710677, %v609_v42  ;;  %v252_v53 = vmul.f32 0.70710677, %v613_v46  ;;  %v622_v55 = vadd.f32 %v473_v47, %v589_v12 }
  0xee   :  { %509 = verf.f32 %v246_v45  ;;  %v625_v56 = vadd.f32 %v589_v12, %v180_v48  ;;  %v247_v0 = vmul.f32 0.70710677, %v619_v54  ;;  %v630_v5 = vadd.f32 %v589_v12, %v212_v50 }
  0xef   :  { %511 = verf.f32 %v254_v49  ;;  %v255_v4 = vmul.f32 0.70710677, %v622_v55  ;;  %v230_v32 = vmul.f32 0.5, %v603_v38  ;;  %v238_v43 = vmul.f32 0.5, %v606_v41 }
  0xf0   :  { %v494_v57 = vpop.eup %493  ;;  %513 = verf.f32 %v244_v52  ;;  %v245_v9 = vmul.f32 0.70710677, %v625_v56  ;;  %v253_v22 = vmul.f32 0.70710677, %v630_v5  ;;  %v228_v48 = vmul.f32 0.5, %v609_v42 }
  0xf1   :  { %v496_v61 = vpop.eup %495  ;;  %v274_v62 = vadd.f32 1.0, %v494_v57  ;;  %515 = verf.f32 %v252_v53  ;;  %v236_v41 = vmul.f32 0.5, %v613_v46 }
  0xf2   :  { %v498_v1 = vpop.eup %497  ;;  %v282_v2 = vadd.f32 1.0, %v496_v61  ;;  %517 = verf.f32 %v247_v0  ;;  %v231_v61 = vmul.f32 0.5, %v619_v54  ;;  %v239_v0 = vmul.f32 0.5, %v622_v55 }
  0xf3   :  { %v500_v6 = vpop.eup %499  ;;  %v290_v7 = vmul.f32 %v274_v62, %v226_v51  ;;  %v272_v8 = vadd.f32 1.0, %v498_v1  ;;  %519 = verf.f32 %v255_v4  ;;  %v229_v54 = vmul.f32 0.5, %v625_v56 }
  0xf4   :  { %v502_v10 = vpop.eup %501  ;;  %v298_v11 = vmul.f32 %v282_v2, %v234_v58  ;;  %v280_v13 = vadd.f32 1.0, %v500_v6  ;;  %521 = verf.f32 %v245_v9 }
  0xf5   :  { %v504_v15 = vpop.eup %503  ;;  %v427_v16 = vpack.c.bf16 %v290_v7, %v290_v7  ;;  %v288_v17 = vmul.f32 %v272_v8, %v224_v59  ;;  %v275_v18 = vadd.f32 1.0, %v502_v10  ;;  %523 = verf.f32 %v253_v22 }
  0xf6   :  { %v506_v19 = vpop.eup %505  ;;  %v435_v20 = vpack.c.bf16 %v298_v11, %v298_v11  ;;  %v296_v12 = vmul.f32 %v280_v13, %v232_v60  ;;  %v283_v21 = vadd.f32 1.0, %v504_v15  ;;  %v237_v10 = vmul.f32 0.5, %v630_v5 }
  0xf7   :  { %v508_v23 = vpop.eup %507  ;;  %371 = vst.msk [vmem:[%s710_s3 + $0x8] sm:$0xf] %vm368_vm2, %v427_v16  ;;  %v425_v24 = vpack.c.bf16 %v288_v17, %v288_v17  ;;  %v291_v25 = vmul.f32 %v275_v18, %v227_v63  ;;  %v273_v26 = vadd.f32 1.0, %v506_v19 }
  0xf8   :  { %v510_v28 = vpop.eup %509  ;;  %379 = vst.msk [vmem:[%s710_s3 + $0x28] sm:$0xf] %vm368_vm2, %v435_v20  ;;  %v433_v29 = vpack.c.bf16 %v296_v12, %v296_v12  ;;  %v299_v30 = vmul.f32 %v283_v21, %v235_v3  ;;  %v281_v31 = vadd.f32 1.0, %v508_v23 }
  0xf9   :  { %v512_v33 = vpop.eup %511  ;;  %369 = vst.msk [vmem:[%s710_s3] sm:$0xf] %vm368_vm2, %v425_v24  ;;  %v428_v34 = vpack.c.bf16 %v291_v25, %v291_v25  ;;  %v289_v35 = vmul.f32 %v273_v26, %v225_v14  ;;  %v278_v36 = vadd.f32 1.0, %v510_v28 }
  0xfa   :  { %v514_v37 = vpop.eup %513  ;;  %377 = vst.msk [vmem:[%s710_s3 + $0x20] sm:$0xf] %vm368_vm2, %v433_v29  ;;  %v436_v39 = vpack.c.bf16 %v299_v30, %v299_v30  ;;  %v297_v40 = vmul.f32 %v281_v31, %v233_v27  ;;  %v286_v44 = vadd.f32 1.0, %v512_v33 }
  0xfb   :  { %v516_v45 = vpop.eup %515  ;;  %372 = vst.msk [vmem:[%s710_s3 + $0xc] sm:$0xf] %vm368_vm2, %v428_v34  ;;  %v426_v47 = vpack.c.bf16 %v289_v35, %v289_v35  ;;  %v294_v38 = vmul.f32 %v278_v36, %v230_v32  ;;  %v276_v49 = vadd.f32 1.0, %v514_v37 }
  0xfc   :  { %380 = vst.msk [vmem:[%s710_s3 + $0x2c] sm:$0xf] %vm368_vm2, %v436_v39  ;;  %v434_v50 = vpack.c.bf16 %v297_v40, %v297_v40  ;;  %v302_v51 = vmul.f32 %v286_v44, %v238_v43  ;;  %v284_v52 = vadd.f32 1.0, %v516_v45  ;;  %v518_v53 = vpop.eup %517 }
  0xfd   :  { %370 = vst.msk [vmem:[%s710_s3 + $0x4] sm:$0xf] %vm368_vm2, %v426_v47  ;;  %v431_v57 = vpack.c.bf16 %v294_v38, %v294_v38  ;;  %v292_v58 = vmul.f32 %v276_v49, %v228_v48  ;;  %v520_v42 = vpop.eup %519  ;;  %v279_v46 = vadd.f32 1.0, %v518_v53 }
  0xfe   :  { %378 = vst.msk [vmem:[%s710_s3 + $0x24] sm:$0xf] %vm368_vm2, %v434_v50  ;;  %v439_v59 = vpack.c.bf16 %v302_v51, %v302_v51  ;;  %v300_v60 = vmul.f32 %v284_v52, %v236_v41  ;;  %v522_v62 = vpop.eup %521  ;;  %v287_v1 = vadd.f32 1.0, %v520_v42 }
  0xff   :  { %375 = vst.msk [vmem:[%s710_s3 + $0x18] sm:$0xf] %vm368_vm2, %v431_v57  ;;  %v429_v63 = vpack.c.bf16 %v292_v58, %v292_v58  ;;  %v295_v3 = vmul.f32 %v279_v46, %v231_v61  ;;  %v277_v4 = vadd.f32 1.0, %v522_v62  ;;  %v524_v7 = vpop.eup %523 }
 0x100   :  { %383 = vst.msk [vmem:[%s710_s3 + $0x38] sm:$0xf] %vm368_vm2, %v439_v59  ;;  %v437_v2 = vpack.c.bf16 %v300_v60, %v300_v60  ;;  %v303_v6 = vmul.f32 %v287_v1, %v239_v0  ;;  %v285_v11 = vadd.f32 1.0, %v524_v7 }
 0x101   :  { %373 = vst.msk [vmem:[%s710_s3 + $0x10] sm:$0xf] %vm368_vm2, %v429_v63  ;;  %v432_v55 = vpack.c.bf16 %v295_v3, %v295_v3  ;;  %v293_v8 = vmul.f32 %v277_v4, %v229_v54 }
 0x102   :  { %381 = vst.msk [vmem:[%s710_s3 + $0x30] sm:$0xf] %vm368_vm2, %v437_v2  ;;  %v440_v9 = vpack.c.bf16 %v303_v6, %v303_v6  ;;  %v301_v13 = vmul.f32 %v285_v11, %v237_v10 }
 0x103   :  { %376 = vst.msk [vmem:[%s710_s3 + $0x1c] sm:$0xf] %vm368_vm2, %v432_v55  ;;  %v430_v56 = vpack.c.bf16 %v293_v8, %v293_v8 }
 0x104   :  { %384 = vst.msk [vmem:[%s710_s3 + $0x3c] sm:$0xf] %vm368_vm2, %v440_v9  ;;  %v438_v14 = vpack.c.bf16 %v301_v13, %v301_v13 }
 0x105   :  { %374 = vst.msk [vmem:[%s710_s3 + $0x14] sm:$0xf] %vm368_vm2, %v430_v56 }
 0x106   :  { %382 = vst.msk [vmem:[%s710_s3 + $0x34] sm:$0xf] %vm368_vm2, %v438_v14 }

</bundles_post_ra>
